<compile_context>
chip_gen: v7x
topology: tpu7x:2x2x1
jax: 0.10.0
libtpu: 0.0.40
codegen_flags: <defaults>
</compile_context>

<pallas_src>
import functools

import jax
import jax.numpy as jnp
from jax import lax
from jax.experimental import pallas as pl
from jax.experimental.pallas import tpu as pltpu

LANES = 128  # channel axis padded to one full vreg lane width


# ----------------------------------------------------------------------------
# pltpu.roll rotation-convention probe (one tiny pallas_call, cached)
# ----------------------------------------------------------------------------
_ROLL_SIGN = None


def _roll_sign():
    """+1 if pltpu.roll follows jnp.roll convention (out[i] = in[(i - shift) % n]),
    -1 if reversed.  Probed once on-device so the fused kernel's static shifts are
    always correct regardless of convention."""
    global _ROLL_SIGN
    if _ROLL_SIGN is None:
        probe = lax.broadcasted_iota(jnp.float32, (8, LANES), 0)  # row r holds r

        def _probe_kernel(x_ref, o_ref):
            o_ref[...] = pltpu.roll(x_ref[...], 1, axis=0)

        rolled = pl.pallas_call(
            _probe_kernel,
            out_shape=jax.ShapeDtypeStruct((8, LANES), jnp.float32),
        )(probe)
        val = float(rolled[0, 0])
        if val == 7.0:          # jnp.roll convention: out[0] = in[-1]
            _ROLL_SIGN = 1
        elif val == 1.0:        # reversed convention: out[0] = in[1]
            _ROLL_SIGN = -1
        else:
            raise RuntimeError(f"unexpected pltpu.roll semantics (probe={val})")
    return _ROLL_SIGN


# ----------------------------------------------------------------------------
# The single fused kernel (one grid step == one batch element)
# ----------------------------------------------------------------------------
def _fused_resnet_kernel(x_ref, fw_ref, fv_ref, bw_ref, bv_ref, hv_ref,
                         cw_ref, cb_ref, out_ref, *, block_cfgs,
                         first_kernel_size, kernel_size, stride, roll_sign):
    # ---- trace-local caches for constant iotas / selection matrices --------
    const_cache = {}

    def row_iota(rows):
        key = ("row", rows)
        if key not in const_cache:
            const_cache[key] = lax.broadcasted_iota(jnp.int32, (rows, LANES), 0)
        return const_cache[key]

    def lane_iota(rows):
        key = ("lane", rows)
        if key not in const_cache:
            const_cache[key] = lax.broadcasted_iota(jnp.int32, (rows, LANES), 1)
        return const_cache[key]

    def sel_matrix(rows, cols, s, phase):
        # M[l, j] = 1.0 iff j == l*s + phase.  M @ x gathers every s-th row in one
        # lane-dense MXU op; out-of-range rows come out exactly zero == SAME padding.
        # Only used for stride > 1 phase gathers.
        key = ("sel", rows, cols, s, phase)
        if key not in const_cache:
            r = lax.broadcasted_iota(jnp.int32, (rows, cols), 0)
            c = lax.broadcasted_iota(jnp.int32, (rows, cols), 1)
            const_cache[key] = (c == r * s + phase).astype(jnp.float32)
        return const_cache[key]

    # ---- row shift with zero fill: out[l] = src[l + off]  (XLU roll + VPU mask)
    def shift_rows(src, off):
        if off == 0:
            return src
        rows = src.shape[0]
        rolled = pltpu.roll(src, (-off * roll_sign) % rows, axis=0)
        r = row_iota(rows)
        mask = r < (rows - off) if off > 0 else r >= (-off)
        return jnp.where(mask, rolled, 0.0)

    # ---- MyConv1dPadSame (groups=1), channels-last (L,128) -> (L_out,128) ---
    # Conv bias is NOT added here (folded into the following affine).
    def conv_same(h, w_tap, ksize, s):
        length = h.shape[0]
        l_out = -(-length // s)
        pad_left = max(0, (l_out - 1) * s + ksize - length) // 2
        if s == 1:
            phases = [h]                      # stride 1: taps are pure row shifts
        else:                                 # phase p holds rows l*s + p
            phases = [jnp.dot(sel_matrix(l_out, length, s, p), h,
                              preferred_element_type=jnp.float32)
                      for p in range(s)]
        acc = None
        for k in range(ksize):
            q, p = divmod(k - pad_left, s)    # tap offset (k - pad_left) = q*s + p
            rows = shift_rows(phases[p], q)
            term = jnp.dot(rows, w_tap(k), preferred_element_type=jnp.float32)
            acc = term if acc is None else acc + term
        return acc

    # ---- MyMaxPool1dPadSame: zero-pad by (k-1), then MaxPool1d(k) (stride k) ----
    def maxpool_same(h, ksize):
        if ksize == 1:
            return h
        length = h.shape[0]
        l_out = (length - 1) // ksize + 1
        pad_left = (ksize - 1) // 2
        phases = [jnp.dot(sel_matrix(l_out, length, ksize, p), h,
                          preferred_element_type=jnp.float32)
                  for p in range(ksize)]
        out = None
        for k in range(ksize):
            q, p = divmod(k - pad_left, ksize)
            v = shift_rows(phases[p], q)
            out = v if out is None else jnp.maximum(out, v)
        return out

    # ---- zero channel-pad of the identity path (lane roll + mask) ----------
    def expand_channels(h, ch1, in_c):
        if ch1 == 0:
            return h                          # lanes >= in_c are already zero
        rolled = pltpu.roll(h, (ch1 * roll_sign) % LANES, axis=1)
        c = lane_iota(h.shape[0])
        keep = jnp.logical_and(c >= ch1, c < ch1 + in_c)
        return jnp.where(keep, rolled, 0.0)

    def vec(ref, row):                        # (1, 128) broadcast row
        return ref[pl.ds(row, 1), :]

    h = x_ref[0]                              # (L0, 128), f32

    # ---- first conv -> (optional first BN, conv bias folded) -> ReLU -------
    h = conv_same(h, lambda k: fw_ref[k], first_kernel_size, 1)
    h = jnp.maximum(h * vec(fv_ref, 0) + vec(fv_ref, 1), 0.0)
    # ---- first maxpool (kernel_size = stride) -------------------------------
    h = maxpool_same(h, stride)

    # ---- residual blocks (static Python loop -> fully unrolled in VMEM) ----
    for bi, bc in enumerate(block_cfgs):
        conv_stride = stride if bc["downsample"] else 1
        identity = h
        out = h
        if not bc["is_first"]:
            # bn1 + relu1   (do1: Dropout == identity in eval mode)
            out = jnp.maximum(
                out * vec(bv_ref, 5 * bi + 0) + vec(bv_ref, 5 * bi + 1), 0.0)
        out = conv_same(out, lambda k, b=bi: bw_ref[(2 * b) * kernel_size + k],
                        kernel_size, conv_stride)
        # bn2 (+ folded conv1 bias) + relu2   (do2: Dropout == identity)
        out = jnp.maximum(
            out * vec(bv_ref, 5 * bi + 2) + vec(bv_ref, 5 * bi + 3), 0.0)
        out = conv_same(out, lambda k, b=bi: bw_ref[(2 * b + 1) * kernel_size + k],
                        kernel_size, 1)
        out = out + vec(bv_ref, 5 * bi + 4)   # conv2 bias
        # TODO(synk): SE block (is_se=True) not implemented; module default is is_se=False.
        if bc["downsample"]:
            identity = maxpool_same(identity, conv_stride)
        if bc["out_c"] != bc["in_c"]:
            identity = expand_channels(identity, (bc["out_c"] - bc["in_c"]) // 2,
                                       bc["in_c"])
        h = out + identity                    # shortcut add

    # ---- head: (optional final BN) -> ReLU -> mean over length -> Linear ---
    h = jnp.maximum(h * vec(hv_ref, 0) + vec(hv_ref, 1), 0.0)
    pooled = jnp.mean(h, axis=0, keepdims=True)               # (1, 128)
    out_ref[0] = (jnp.dot(pooled, cw_ref[...], preferred_element_type=jnp.float32)
                  + cb_ref[...])


# ----------------------------------------------------------------------------
# Parameter packing (channels zero-padded to 128 lanes, bias/BN folded)
# ----------------------------------------------------------------------------
def _bn_affine(bn, eps=1e-5):
    scale = bn["gamma"] / jnp.sqrt(bn["var"] + eps)
    shift = bn["beta"] - bn["mean"] * scale
    return scale, shift


def _pad_vec(v):
    return jnp.pad(v.astype(jnp.float32), (0, LANES - v.shape[0]))


def _pack_conv(w):
    # torch layout (out_c, in_c, K) -> per-tap (K, 128, 128) with [k, c_in, c_out]
    out_c, in_c, _ = w.shape
    w_t = jnp.transpose(w.astype(jnp.float32), (2, 1, 0))
    return jnp.pad(w_t, ((0, 0), (0, LANES - in_c), (0, LANES - out_c)))


def _pack_params(params, cfg, n_batch):
    # mirrors `if x.shape[0] < 4: self.use_bn = False` (top-level first/final BN
    # only; block BNs keep their construction-time use_bn == cfg["use_bn"])
    top_use_bn = cfg["use_bn"] and (n_batch >= 4)

    fw = _pack_conv(params["first_conv"]["w"])                       # (K1,128,128)
    fb = params["first_conv"]["b"]
    if top_use_bn:
        s, t = _bn_affine(params["first_bn"])
        f_scale, f_shift = s, s * fb + t                             # fold conv bias
    else:
        f_scale, f_shift = jnp.ones_like(fb), fb
    fv = jnp.stack([_pad_vec(f_scale), _pad_vec(f_shift)])           # (2,128)

    bw_parts, bv_rows = [], []
    for blk, bc in zip(params["blocks"], cfg["block_cfgs"]):
        b1, b2 = blk["conv1"]["b"], blk["conv2"]["b"]
        if cfg["use_bn"]:
            s1, t1 = _bn_affine(blk["bn1"])
            s2, t2 = _bn_affine(blk["bn2"])
        else:
            s1 = jnp.ones((bc["in_c"],), jnp.float32)
            t1 = jnp.zeros((bc["in_c"],), jnp.float32)
            s2 = jnp.ones((bc["out_c"],), jnp.float32)
            t2 = jnp.zeros((bc["out_c"],), jnp.float32)
        bw_parts.append(_pack_conv(blk["conv1"]["w"]))
        bw_parts.append(_pack_conv(blk["conv2"]["w"]))
        bv_rows += [_pad_vec(s1), _pad_vec(t1),                      # bn1 affine
                    _pad_vec(s2), _pad_vec(s2 * b1 + t2),            # bn2 (+conv1 bias)
                    _pad_vec(b2)]                                    # conv2 bias
    bw = jnp.concatenate(bw_parts, axis=0)                           # (nb*2*K,128,128)
    bv = jnp.stack(bv_rows)                                          # (nb*5,128)

    out_c = cfg["block_cfgs"][-1]["out_c"]
    if top_use_bn:
        hs, ht = _bn_affine(params["final_bn"])
    else:
        hs = jnp.ones((out_c,), jnp.float32)
        ht = jnp.zeros((out_c,), jnp.float32)
    hv = jnp.stack([_pad_vec(hs), _pad_vec(ht)])                     # (2,128)

    cw = jnp.pad(params["clf_w"].astype(jnp.float32),
                 ((0, LANES - out_c), (0, LANES - cfg["output_size"])))  # (128,128)
    cb = _pad_vec(params["clf_b"]).reshape(1, LANES)                 # (1,128)
    return fw, fv, bw, bv, hv, cw, cb


# ----------------------------------------------------------------------------
# Forward wrapper: one pallas_call for the whole network
# ----------------------------------------------------------------------------
def resnet1d_forward(x, params, cfg):
    # x = x['ppg'] : (n_samples, n_channel, n_length)
    assert x.ndim == 3
    n, c_in, length = x.shape
    fw, fv, bw, bv, hv, cw, cb = _pack_params(params, cfg, n)
    # channels-last, lane-padded input: (n, L, 128)
    xp = jnp.pad(jnp.transpose(x.astype(jnp.float32), (0, 2, 1)),
                 ((0, 0), (0, 0), (0, LANES - c_in)))

    kern = functools.partial(
        _fused_resnet_kernel,
        block_cfgs=tuple(cfg["block_cfgs"]),
        first_kernel_size=cfg["first_kernel_size"],
        kernel_size=cfg["kernel_size"],
        stride=cfg["stride"],
        roll_sign=_roll_sign(),
    )
    out_padded = pl.pallas_call(
        kern,
        out_shape=jax.ShapeDtypeStruct((n, 1, LANES), jnp.float32),
        grid=(n,),
        in_specs=[
            pl.BlockSpec((1, length, LANES), lambda i: (i, 0, 0)),   # x (per batch)
            pl.BlockSpec(fw.shape, lambda i: (0, 0, 0)),             # first conv taps
            pl.BlockSpec(fv.shape, lambda i: (0, 0)),                # first affine
            pl.BlockSpec(bw.shape, lambda i: (0, 0, 0)),             # block conv taps
            pl.BlockSpec(bv.shape, lambda i: (0, 0)),                # block vectors
            pl.BlockSpec(hv.shape, lambda i: (0, 0)),                # final affine
            pl.BlockSpec(cw.shape, lambda i: (0, 0)),                # classifier W
            pl.BlockSpec(cb.shape, lambda i: (0, 0)),                # classifier b
        ],
        out_specs=pl.BlockSpec((1, 1, LANES), lambda i: (i, 0, 0)),
        compiler_params=pltpu.CompilerParams(
            dimension_semantics=("parallel",),   # megacore: cores split the batch
            vmem_limit_bytes=32 * 1024 * 1024,   # explicit budget (usage ~7 MiB)
        ),
    )(xp, fw, fv, bw, bv, hv, cw, cb)
    return out_padded[:, 0, :cfg["output_size"]]


# ----------------------------------------------------------------------------
# Model definition (mirrors ResNet1D_original.__init__)
# ----------------------------------------------------------------------------
def make_block_cfgs(base_filters, n_block, downsample_gap, increasefilter_gap):
    cfgs = []
    for i in range(n_block):
        is_first = i == 0
        downsample = (i % downsample_gap) == 1
        if is_first:
            in_c = base_filters
            out_c = in_c
        else:
            in_c = int(base_filters * 2 ** ((i - 1) // increasefilter_gap))
            if i % increasefilter_gap == 0 and i != 0:
                out_c = in_c * 2
            else:
                out_c = in_c
        cfgs.append(dict(in_c=in_c, out_c=out_c, downsample=downsample, is_first=is_first))
    return cfgs


def bn_params(key, c):
    k1, k2, k3, k4 = jax.random.split(key, 4)
    return dict(
        gamma=1.0 + 0.1 * jax.random.normal(k1, (c,), jnp.float32),
        beta=0.1 * jax.random.normal(k2, (c,), jnp.float32),
        mean=0.1 * jax.random.normal(k3, (c,), jnp.float32),
        var=1.0 + 0.1 * jnp.abs(jax.random.normal(k4, (c,), jnp.float32)),
    )


def conv_params(key, cout, cin, k):
    k1, k2 = jax.random.split(key)
    return dict(
        w=0.1 * jax.random.normal(k1, (cout, cin, k), jnp.float32),
        b=0.01 * jax.random.normal(k2, (cout,), jnp.float32),
    )


def init_params(key, cfg):
    n_keys = 4 + 4 * cfg["n_block"]
    keys = iter(jax.random.split(key, n_keys))
    params = {}
    params["first_conv"] = conv_params(
        next(keys), cfg["base_filters"], cfg["in_channels"], cfg["first_kernel_size"])
    params["first_bn"] = bn_params(next(keys), cfg["base_filters"])
    blocks = []
    for bc in cfg["block_cfgs"]:
        blocks.append({
            "bn1": bn_params(next(keys), bc["in_c"]),
            "conv1": conv_params(next(keys), bc["out_c"], bc["in_c"], cfg["kernel_size"]),
            "bn2": bn_params(next(keys), bc["out_c"]),
            "conv2": conv_params(next(keys), bc["out_c"], bc["out_c"], cfg["kernel_size"]),
        })
    params["blocks"] = blocks
    out_c = cfg["block_cfgs"][-1]["out_c"]
    kw, kb = jax.random.split(next(keys))
    # stored pre-transposed as (out_channels, output_size) so y = h @ W + b
    params["clf_w"] = 0.1 * jax.random.normal(kw, (out_c, cfg["output_size"]), jnp.float32)
    params["clf_b"] = 0.01 * jax.random.normal(kb, (cfg["output_size"],), jnp.float32)
    return params


# ----------------------------------------------------------------------------
# Pure-JAX reference mirroring the PyTorch module (eval mode) -- used as an
# independent correctness check in __main__.
# ----------------------------------------------------------------------------
def _ref_conv1d_same(x, w, b, stride):
    n, c_in, L = x.shape
    k = w.shape[-1]
    l_out = -(-L // stride)
    p = max(0, (l_out - 1) * stride + k - L)
    pad_left = p // 2
    xp = jnp.pad(x, ((0, 0), (0, 0), (pad_left, p - pad_left)))
    out = lax.conv_general_dilated(
        xp, w, window_strides=(stride,), padding="VALID",
        dimension_numbers=("NCH", "OIH", "NCH"),
        precision=lax.Precision.HIGHEST)
    return out + b[None, :, None]


def _ref_maxpool1d_same(x, k):
    if k == 1:
        return x
    p = k - 1
    pad_left = p // 2
    xp = jnp.pad(x, ((0, 0), (0, 0), (pad_left, p - pad_left)))
    return lax.reduce_window(xp, -jnp.inf, lax.max, (1, 1, k), (1, 1, k), "VALID")


def _ref_bn(x, bn, eps=1e-5):
    return ((x - bn["mean"][None, :, None])
            / jnp.sqrt(bn["var"][None, :, None] + eps)
            * bn["gamma"][None, :, None] + bn["beta"][None, :, None])


def resnet1d_reference(x, params, cfg):
    n = x.shape[0]
    top_use_bn = cfg["use_bn"] and (n >= 4)
    out = _ref_conv1d_same(x, params["first_conv"]["w"], params["first_conv"]["b"], 1)
    if top_use_bn:
        out = _ref_bn(out, params["first_bn"])
    out = jnp.maximum(out, 0.0)
    out = _ref_maxpool1d_same(out, cfg["stride"])
    for bc, blk in zip(cfg["block_cfgs"], params["blocks"]):
        identity = out
        h = out
        if not bc["is_first"]:
            if cfg["use_bn"]:
                h = _ref_bn(h, blk["bn1"])
            h = jnp.maximum(h, 0.0)
        h = _ref_conv1d_same(h, blk["conv1"]["w"], blk["conv1"]["b"],
                             cfg["stride"] if bc["downsample"] else 1)
        if cfg["use_bn"]:
            h = _ref_bn(h, blk["bn2"])
        h = jnp.maximum(h, 0.0)
        h = _ref_conv1d_same(h, blk["conv2"]["w"], blk["conv2"]["b"], 1)
        if bc["downsample"]:
            identity = _ref_maxpool1d_same(identity, cfg["stride"])
        if bc["out_c"] != bc["in_c"]:
            ch1 = (bc["out_c"] - bc["in_c"]) // 2
            ch2 = bc["out_c"] - bc["in_c"] - ch1
            identity = jnp.pad(identity, ((0, 0), (ch1, ch2), (0, 0)))
        out = h + identity
    if top_use_bn:
        out = _ref_bn(out, params["final_bn"])
    h = jnp.maximum(out, 0.0)
    pooled = h.mean(-1)
    return jnp.dot(pooled, params["clf_w"], precision=lax.Precision.HIGHEST) + params["clf_b"]


# ----------------------------------------------------------------------------
if __name__ == "__main__":
    cfg = dict(
        in_channels=1,
        base_filters=16,
        first_kernel_size=9,
        kernel_size=5,
        stride=2,
        groups=1,
        n_block=4,
        output_size=2,
        downsample_gap=2,
        increasefilter_gap=2,
        use_bn=True,
        use_do=True,
    )
    # TODO(synk): grouped convolution (groups > 1) not implemented; groups=1 here.
    assert cfg["groups"] == 1
    cfg["block_cfgs"] = make_block_cfgs(
        cfg["base_filters"], cfg["n_block"], cfg["downsample_gap"], cfg["increasefilter_gap"])

    key = jax.random.PRNGKey(0)
    kp, kx = jax.random.split(key)
    params = init_params(kp, cfg)

    # x['ppg']: (n_samples=2, n_channel=1, n_length=64)
    x = jax.random.normal(kx, (2, cfg["in_channels"], 64), jnp.float32)

    out = resnet1d_forward(x, params, cfg)
    out = jax.block_until_ready(out)
    assert out.shape == (2, cfg["output_size"])
    assert bool(jnp.all(jnp.isfinite(out)))

    # correctness check against the pure-JAX reference (PyTorch-eval semantics)
    ref = jax.block_until_ready(resnet1d_reference(x, params, cfg))
    max_err = float(jnp.max(jnp.abs(out - ref)))
    assert max_err < 5e-3, f"kernel/reference mismatch: max abs err = {max_err}"

    print("KERNEL_OK")
</pallas_src>

<mosaic_0001>
module attributes {stable_mosaic.version = 11 : i64} {
  func.func @_probe_kernel(%arg0: memref<8x128xf32, #tpu.memory_space<vmem>>, %arg1: memref<8x128xf32, #tpu.memory_space<vmem>>) attributes {dimension_semantics = [], scalar_prefetch = 0 : i64, scratch_operands = 0 : i64, tpu.core_type = #tpu.core_type<tc>} {
    %c0 = arith.constant 0 : index
    %c0_0 = arith.constant 0 : index
    %0 = vector.load %arg0[%c0, %c0_0] : memref<8x128xf32, #tpu.memory_space<vmem>>, vector<8x128xf32>
    %c1_i32 = arith.constant 1 : i32
    %1 = tpu.dynamic_rotate %0 by %c1_i32 dim 0 : vector<8x128xf32>, i32 -> vector<8x128xf32>
    %c0_1 = arith.constant 0 : index
    %c0_2 = arith.constant 0 : index
    %2 = vector.load %arg1[%c0_1, %c0_2] : memref<8x128xf32, #tpu.memory_space<vmem>>, vector<8x128xf32>
    tpu.vector_store %arg1[%c0_1, %c0_2], %1 {strides = array<i32>} : memref<8x128xf32, #tpu.memory_space<vmem>>, vector<8x128xf32>,
    return
  }
}

</mosaic_0001>

<bundles_post_ra>
// kernel: tpu_custom_call.1
= control target key start
LH: loop header
LB: loop body
LE: loop exit
PB: predicated region body
PF: predicated region fallthrough
CT: control target
= control target key end

     0   :  { %6 = vsyncpa [#allocation3], 0  ;;  %s125_s0 = inlined_call_operand.hbm [shape: f32[8,128], index: 0, kind: input, shape index: {}]   ;;  %s126_s1 = inlined_call_operand.hbm [shape: f32[8,128], index: 1, kind: output, shape index: {}]  }
   0x1   :  { %7 = vsyncpa [#allocation4], 0  ;;  %s89_s6 = smov [#allocation2]   ;;  %s41_s10 = scalar_lea.hbm %s125_s0, 128 }
   0x2   :  { %s14_s7 = sshll.u32 %s89_s6, 4  ;;  %p42_p0 = scmp.ne.s32.totalorder %s125_s0, %s41_s10  ;;  %s15_s7 = int_to_ptr.vmem [resolvable:$true] %s14_s7 }
   0x3   :  { %p45_p1 = scmp.lt.u32.totalorder %s41_s10, %s125_s0 }
   0x5   :  { %p47_p2 = pnand %p45_p1, %p42_p0 }
   0x7   :  { %50 = shalt.err (!%p47_p2)
}
   0x8   :  { %s51_s15 = scalar_lea.vmem %s15_s7, 128  ;;  %p56_p4 = scmp.lt.s32.totalorder %s15_s7, %s15_s7 }
   0x9   :  { %p52_p3 = scmp.ne.s32.totalorder %s15_s7, %s51_s15  ;;  %p57_p5 = scmp.lt.s32.totalorder %s51_s15, %s51_s15 }
   0xb   :  { %p58_p6 = por %p57_p5, %p56_p4 }
   0xd   :  { %p59_p7 = pnand %p58_p6, %p52_p3 }
   0xf   :  { %62 = shalt.err (!%p59_p7)
}
  0x10   :  { %17 = dma.hbm_to_vmem [thread:$0]  %s125_s0, 128, %s15_s7, [#allocation3]  }
  0x11   :  { %85 = dma.done.wait [#allocation3], 128  }
  0x12   :  { %86 = vsyncadd [#allocation3], 4294967168  ;;  %s90_s18 = smov [#allocation5]   ;;  %v21_v0 = vld [vmem:[#allocation2] sm:$0xff] }
  0x13   :  { %s30_s19 = sshll.u32 %s90_s18, 4  ;;  %v22_v1 = vrot.slane %v21_v0, 7  ;;  %s31_s19 = int_to_ptr.vmem [resolvable:$true] %s30_s19 }
  0x14   :  { %s63_s20 = scalar_lea.vmem %s31_s19, 128  ;;  %p68_p9 = scmp.lt.s32.totalorder %s31_s19, %s31_s19 }
  0x15   :  { %23 = vst [vmem:[#allocation5] sm:$0xff] %v22_v1  ;;  %p64_p8 = scmp.ne.s32.totalorder %s31_s19, %s63_s20  ;;  %p69_p10 = scmp.lt.s32.totalorder %s63_s20, %s63_s20 }
  0x17   :  { %p70_p11 = por %p69_p10, %p68_p9 }
  0x19   :  { %p71_p12 = pnand %p70_p11, %p64_p8 }
  0x1b   :  { %74 = shalt.err (!%p71_p12)
}
  0x1c   :  { %s75_s23 = scalar_lea.hbm %s126_s1, 128 }
  0x1d   :  { %p76_p13 = scmp.ne.s32.totalorder %s126_s1, %s75_s23  ;;  %p79_p0 = scmp.lt.u32.totalorder %s75_s23, %s126_s1 }
  0x1f   :  { %p81_p1 = pnand %p79_p0, %p76_p13 }
  0x21   :  { %84 = shalt.err (!%p81_p1)
}
  0x22   :  { %33 = dma.vmem_to_hbm [thread:$0]  %s31_s19, 128, %s126_s1, [#allocation4]  }
  0x23   :  { %87 = dma.done.wait [#allocation4], 128  }
  0x24   :  { %88 = vsyncadd [#allocation4], 4294967168 }
  0x25   :  { %37 = vsyncpa [#allocation3], 1 }
  0x26   :  { %38 = vsyncpa [#allocation4], 1 }

</bundles_post_ra>
